<compile_context>
chip_gen: v6e
topology: v6e:2x2x1
jax: 0.10.0
libtpu: 0.0.40
codegen_flags: <defaults>
</compile_context>

<pallas_src>
import functools
import itertools
from concurrent.futures import ThreadPoolExecutor

import numpy as np
import jax
import jax.numpy as jnp
from jax.experimental import pallas as pl
from jax.experimental.pallas import tpu as pltpu


def _round_up(x, m):
    return ((x + m - 1) // m) * m


def _cost_kernel(logits_ref, boxes_pred_ref, boxes_tgt_t_ref, onehot_ref,
                 out_ref, *, lambda_classes, lambda_l1):
    # class cost: -logits[:, class_j]  ->  -(logits @ onehot)   (MXU, bf16 x bf16 -> f32)
    class_cost = -jnp.dot(logits_ref[...], onehot_ref[...],
                          preferred_element_type=jnp.float32)      # [TM, T_pad] f32

    # pairwise L1 (cdist p=1) over the 4 box coords (VPU, unrolled).
    bp = boxes_pred_ref[...]                                       # [TM, 4]    f32
    bt = boxes_tgt_t_ref[...]                                      # [4, T_pad] f32
    l1 = jnp.abs(bp[:, 0:1] - bt[0:1, :])
    for k in range(1, 4):
        l1 = l1 + jnp.abs(bp[:, k:k + 1] - bt[k:k + 1, :])

    out_ref[...] = (lambda_classes * class_cost + lambda_l1 * l1).astype(out_ref.dtype)


def compute_cost_matrix(logits_flat, boxes_flat, boxes_tgt, classes_tgt,
                        lambda_classes, lambda_l1, *, tile_m=1024):
    """Returns cost [B*Q, T] (float32). T is the total number of target boxes."""
    bq, num_classes = logits_flat.shape
    t = boxes_tgt.shape[0]

    c_pad = _round_up(num_classes, 128)          # 92 -> 128
    t_pad = _round_up(max(t, 1), 128)            # lane-dense output / MXU N dim
    # Row tile: multiple of 8, sized to fit comfortably under the scoped VMEM
    # limit of every generation (v7x 32 MiB scoped / 64 MiB physical included):
    # 2x double-buffered (TM*C_pad*bf16 + TM*T_pad*f32 + small) << 32 MiB at TM=1024.
    tm = min(tile_m, _round_up(bq, 8))
    bq_pad = _round_up(bq, tm)

    # Zero-pad rows/lanes.  Padded rows and padded target columns are never read
    # back by the host; padded classes contribute nothing (all-zero one-hot col).
    logits_p = jnp.zeros((bq_pad, c_pad), jnp.bfloat16)
    logits_p = logits_p.at[:bq, :num_classes].set(logits_flat.astype(jnp.bfloat16))
    boxes_p = jnp.zeros((bq_pad, 4), jnp.float32)
    boxes_p = boxes_p.at[:bq, :].set(boxes_flat.astype(jnp.float32))

    boxes_tgt_t = jnp.zeros((4, t_pad), jnp.float32)
    boxes_tgt_t = boxes_tgt_t.at[:, :t].set(boxes_tgt.astype(jnp.float32).T)

    # Sentinel class id (== c_pad, out of range) -> all-zero one-hot column.
    cls = jnp.full((t_pad,), c_pad, dtype=jnp.int32)
    cls = cls.at[:t].set(classes_tgt.astype(jnp.int32))
    onehot_ct = jax.nn.one_hot(cls, c_pad, dtype=jnp.bfloat16).T   # [C_pad, T_pad]

    kernel = functools.partial(_cost_kernel,
                               lambda_classes=float(lambda_classes),
                               lambda_l1=float(lambda_l1))
    cost = pl.pallas_call(
        kernel,
        out_shape=jax.ShapeDtypeStruct((bq_pad, t_pad), jnp.float32),
        grid=(bq_pad // tm,),
        in_specs=[
            pl.BlockSpec((tm, c_pad), lambda i: (i, 0)),       # logits (bf16)
            pl.BlockSpec((tm, 4), lambda i: (i, 0)),           # pred boxes
            pl.BlockSpec((4, t_pad), lambda i: (0, 0)),        # target boxes^T (resident)
            pl.BlockSpec((c_pad, t_pad), lambda i: (0, 0)),    # one-hot (resident)
        ],
        out_specs=pl.BlockSpec((tm, t_pad), lambda i: (i, 0)),
        compiler_params=pltpu.CompilerParams(
            dimension_semantics=("parallel",)),                # megacore on v7x
    )(logits_p, boxes_p, boxes_tgt_t, onehot_ct)

    return cost[:bq, :t]


def _linear_sum_assignment_host(cost):
    """Exact rectangular assignment on host (scipy if present, else brute force)."""
    cost = np.asarray(cost, dtype=np.float64)
    try:
        from scipy.optimize import linear_sum_assignment as lsa
        r, c = lsa(cost)
        return np.asarray(r, dtype=np.int64), np.asarray(c, dtype=np.int64)
    except ImportError:
        n_rows, n_cols = cost.shape
        transpose = n_rows < n_cols
        if transpose:
            cost = cost.T
            n_rows, n_cols = cost.shape
        best, best_rows = None, None
        for rows in itertools.permutations(range(n_rows), n_cols):
            s = cost[list(rows), range(n_cols)].sum()
            if best is None or s < best:
                best, best_rows = s, rows
        rows = np.asarray(best_rows, dtype=np.int64)
        cols = np.arange(n_cols, dtype=np.int64)
        if transpose:
            rows, cols = cols, rows
        order = np.argsort(rows)
        return rows[order], cols[order]


class HungarianMatcher:
    def __init__(self, lambda_classes, lambda_l1):
        self.lambda_classes = lambda_classes
        self.lambda_l1 = lambda_l1

    def __call__(self, predictions, labels):
        logits = predictions['logits']             # [B, Q, 92]
        bboxes = predictions['bboxes']             # [B, Q, 4]
        batch_size, num_queries = logits.shape[:2]

        boxes_per_batch = [int(l['bboxes'].shape[0]) for l in labels]
        total_t = sum(boxes_per_batch)
        if total_t == 0:                           # nothing to match
            empty = jnp.zeros((0,), dtype=jnp.int32)
            return [[empty, empty] for _ in range(batch_size)]

        flat_boxes_pred = bboxes.reshape(batch_size * num_queries, 4)
        flat_classes_pred = logits.reshape(batch_size * num_queries, -1)
        flat_boxes_labels = jnp.concatenate([l['bboxes'] for l in labels], 0)
        flat_classes_labels = jnp.concatenate([l['classes'] for l in labels], 0)

        cost = compute_cost_matrix(flat_classes_pred, flat_boxes_pred,
                                   flat_boxes_labels, flat_classes_labels,
                                   self.lambda_classes, self.lambda_l1)

        # Single D2H transfer of the whole cost volume.
        cost = np.asarray(jax.device_get(cost)).reshape(
            batch_size, num_queries, total_t)

        offsets = np.cumsum([0] + boxes_per_batch)

        def solve(b):
            sub = cost[b, :, offsets[b]:offsets[b + 1]]
            if sub.shape[1] == 0:
                return np.zeros((0,), np.int64), np.zeros((0,), np.int64)
            return _linear_sum_assignment_host(sub)

        # TODO(synk): linear_sum_assignment (Hungarian) is inherently sequential /
        # combinatorial with no clean Pallas equivalent; it runs on host,
        # parallelized over the batch with a thread pool.
        with ThreadPoolExecutor(max_workers=max(1, min(batch_size, 8))) as pool:
            results = list(pool.map(solve, range(batch_size)))

        return [[jnp.asarray(p, dtype=jnp.int32), jnp.asarray(t, dtype=jnp.int32)]
                for p, t in results]


if __name__ == "__main__":
    key = jax.random.PRNGKey(0)
    batch_size, num_queries, num_classes = 2, 8, 92
    objects_per_image = [3, 4]

    k1, k2, k3, k4 = jax.random.split(key, 4)
    predictions = {
        'logits': jax.random.normal(k1, (batch_size, num_queries, num_classes),
                                    dtype=jnp.float32),
        'bboxes': jax.random.uniform(k2, (batch_size, num_queries, 4),
                                     dtype=jnp.float32),
    }
    labels = []
    for i, n_obj in enumerate(objects_per_image):
        kb, kc = jax.random.split(jax.random.fold_in(k3, i))
        labels.append({
            'bboxes': jax.random.uniform(kb, (n_obj, 4), dtype=jnp.float32),
            'classes': jax.random.randint(kc, (n_obj,), 0, num_classes,
                                          dtype=jnp.int32),
        })

    matcher = HungarianMatcher(lambda_classes=1.0, lambda_l1=5.0)
    indices = matcher(predictions, labels)
    for pred_idx, tgt_idx in indices:
        jax.block_until_ready(pred_idx)
        jax.block_until_ready(tgt_idx)
    print("KERNEL_OK")
</pallas_src>

<mosaic_0001>
module attributes {stable_mosaic.version = 11 : i64} {
  func.func @_cost_kernel(%arg0: i32, %arg1: memref<16x128xbf16, #tpu.memory_space<vmem>>, %arg2: memref<16x4xf32, #tpu.memory_space<vmem>>, %arg3: memref<4x128xf32, #tpu.memory_space<vmem>>, %arg4: memref<128x128xbf16, #tpu.memory_space<vmem>>, %arg5: memref<16x128xf32, #tpu.memory_space<vmem>>) attributes {dimension_semantics = [#tpu.dimension_semantics<parallel>], iteration_bounds = array<i64: 1>, scalar_prefetch = 0 : i64, scratch_operands = 0 : i64, tpu.core_type = #tpu.core_type<tc>, window_params = [{transform_indices = @transform_0, window_bounds = array<i64: 16, 128>}, {transform_indices = @transform_1, window_bounds = array<i64: 16, 4>}, {pipeline_mode = #tpu.pipeline_mode<synchronous>, transform_indices = @transform_2, window_bounds = array<i64: 4, 128>}, {pipeline_mode = #tpu.pipeline_mode<synchronous>, transform_indices = @transform_3, window_bounds = array<i64: 128, 128>}, {transform_indices = @transform_4, window_bounds = array<i64: 16, 128>}]} {
    %c0 = arith.constant 0 : index
    %c0_0 = arith.constant 0 : index
    %0 = vector.load %arg1[%c0, %c0_0] : memref<16x128xbf16, #tpu.memory_space<vmem>>, vector<16x128xbf16>
    %c0_1 = arith.constant 0 : index
    %c0_2 = arith.constant 0 : index
    %1 = vector.load %arg4[%c0_1, %c0_2] : memref<128x128xbf16, #tpu.memory_space<vmem>>, vector<128x128xbf16>
    %cst = arith.constant dense<0.000000e+00> : vector<16x128xf32>
    %2 = tpu.matmul %0, %1, %cst {dimension_numbers = #tpu.dot_dimension_numbers<[1], [0], [0], [1], [0, 0, 1, 1], [], []>} : vector<16x128xbf16>, vector<128x128xbf16>, vector<16x128xf32> -> vector<16x128xf32>
    %cst_3 = arith.constant 0.000000e+00 : f32
    %3 = vector.broadcast %cst_3 : f32 to vector<16x128xf32>
    %4 = arith.subf %3, %2 : vector<16x128xf32>
    %c0_4 = arith.constant 0 : index
    %c0_5 = arith.constant 0 : index
    %5 = vector.load %arg2[%c0_4, %c0_5] : memref<16x4xf32, #tpu.memory_space<vmem>>, vector<16x4xf32>
    %c0_6 = arith.constant 0 : index
    %c0_7 = arith.constant 0 : index
    %6 = vector.load %arg3[%c0_6, %c0_7] : memref<4x128xf32, #tpu.memory_space<vmem>>, vector<4x128xf32>
    %7 = vector.extract_strided_slice %5 {offsets = [0, 0], sizes = [16, 1], strides = [1, 1]} : vector<16x4xf32> to vector<16x1xf32>
    %8 = vector.extract_strided_slice %6 {offsets = [0, 0], sizes = [1, 128], strides = [1, 1]} : vector<4x128xf32> to vector<1x128xf32>
    %9 = vector.broadcast %7 : vector<16x1xf32> to vector<16x128xf32>
    %10 = vector.broadcast %8 : vector<1x128xf32> to vector<16x128xf32>
    %11 = arith.subf %9, %10 : vector<16x128xf32>
    %12 = math.absf %11 : vector<16x128xf32>
    %13 = vector.extract_strided_slice %5 {offsets = [0, 1], sizes = [16, 1], strides = [1, 1]} : vector<16x4xf32> to vector<16x1xf32>
    %14 = vector.extract_strided_slice %6 {offsets = [1, 0], sizes = [1, 128], strides = [1, 1]} : vector<4x128xf32> to vector<1x128xf32>
    %15 = vector.broadcast %13 : vector<16x1xf32> to vector<16x128xf32>
    %16 = vector.broadcast %14 : vector<1x128xf32> to vector<16x128xf32>
    %17 = arith.subf %15, %16 : vector<16x128xf32>
    %18 = math.absf %17 : vector<16x128xf32>
    %19 = arith.addf %12, %18 : vector<16x128xf32>
    %20 = vector.extract_strided_slice %5 {offsets = [0, 2], sizes = [16, 1], strides = [1, 1]} : vector<16x4xf32> to vector<16x1xf32>
    %21 = vector.extract_strided_slice %6 {offsets = [2, 0], sizes = [1, 128], strides = [1, 1]} : vector<4x128xf32> to vector<1x128xf32>
    %22 = vector.broadcast %20 : vector<16x1xf32> to vector<16x128xf32>
    %23 = vector.broadcast %21 : vector<1x128xf32> to vector<16x128xf32>
    %24 = arith.subf %22, %23 : vector<16x128xf32>
    %25 = math.absf %24 : vector<16x128xf32>
    %26 = arith.addf %19, %25 : vector<16x128xf32>
    %27 = vector.extract_strided_slice %5 {offsets = [0, 3], sizes = [16, 1], strides = [1, 1]} : vector<16x4xf32> to vector<16x1xf32>
    %28 = vector.extract_strided_slice %6 {offsets = [3, 0], sizes = [1, 128], strides = [1, 1]} : vector<4x128xf32> to vector<1x128xf32>
    %29 = vector.broadcast %27 : vector<16x1xf32> to vector<16x128xf32>
    %30 = vector.broadcast %28 : vector<1x128xf32> to vector<16x128xf32>
    %31 = arith.subf %29, %30 : vector<16x128xf32>
    %32 = math.absf %31 : vector<16x128xf32>
    %33 = arith.addf %26, %32 : vector<16x128xf32>
    %cst_8 = arith.constant 1.000000e+00 : f32
    %34 = vector.broadcast %cst_8 : f32 to vector<16x128xf32>
    %35 = arith.mulf %34, %4 : vector<16x128xf32>
    %cst_9 = arith.constant 5.000000e+00 : f32
    %36 = vector.broadcast %cst_9 : f32 to vector<16x128xf32>
    %37 = arith.mulf %36, %33 : vector<16x128xf32>
    %38 = arith.addf %35, %37 : vector<16x128xf32>
    %c0_10 = arith.constant 0 : index
    %c0_11 = arith.constant 0 : index
    %39 = vector.load %arg5[%c0_10, %c0_11] : memref<16x128xf32, #tpu.memory_space<vmem>>, vector<16x128xf32>
    tpu.vector_store %arg5[%c0_10, %c0_11], %38 {strides = array<i32>} : memref<16x128xf32, #tpu.memory_space<vmem>>, vector<16x128xf32>,
    return
  }
  func.func @transform_0(%arg0: i32) -> (i32, i32) {
    %c0_i32 = arith.constant 0 : i32
    %c0_i32_0 = arith.constant 0 : i32
    return %arg0, %c0_i32 : i32, i32
  }
  func.func @transform_1(%arg0: i32) -> (i32, i32) {
    %c0_i32 = arith.constant 0 : i32
    %c0_i32_0 = arith.constant 0 : i32
    return %arg0, %c0_i32 : i32, i32
  }
  func.func @transform_2(%arg0: i32) -> (i32, i32) {
    %c0_i32 = arith.constant 0 : i32
    %c0_i32_0 = arith.constant 0 : i32
    %c0_i32_1 = arith.constant 0 : i32
    return %c0_i32, %c0_i32_0 : i32, i32
  }
  func.func @transform_3(%arg0: i32) -> (i32, i32) {
    %c0_i32 = arith.constant 0 : i32
    %c0_i32_0 = arith.constant 0 : i32
    %c0_i32_1 = arith.constant 0 : i32
    return %c0_i32, %c0_i32_0 : i32, i32
  }
  func.func @transform_4(%arg0: i32) -> (i32, i32) {
    %c0_i32 = arith.constant 0 : i32
    %c0_i32_0 = arith.constant 0 : i32
    return %arg0, %c0_i32 : i32, i32
  }
}

</mosaic_0001>

<bundles_post_ra>
// kernel: tpu_custom_call.1
= control target key start
LH: loop header
LB: loop body
LE: loop exit
PB: predicated region body
PF: predicated region fallthrough
CT: control target
= control target key end

     0   :  { %9 = vsyncpa [#allocation3], 0  ;;  %s410_s0 = inlined_call_operand.vmem [shape: bf16[16,128], index: 0, kind: input, shape index: {}]   ;;  %s411_s1 = inlined_call_operand.vmem [shape: f32[16,4], index: 1, kind: input, shape index: {}]   ;;  %s412_s2 = inlined_call_operand.vmem [shape: f32[4,128], index: 2, kind: input, shape index: {}]   ;;  %s413_s3 = inlined_call_operand.hbm [shape: bf16[128,128], index: 3, kind: input, shape index: {}]   ;;  %s414_s4 = inlined_call_operand.hbm [shape: f32[16,128], index: 4, kind: output, shape index: {}]  }
   0x1   :  { %10 = vsyncpa [#allocation4], 0  ;;  %s355_s15 = smov [#allocation2]  }
   0x2   :  { %s22_s16 = sshll.u32 %s355_s15, 4  ;;  %s23_s16 = int_to_ptr.vmem [resolvable:$true] %s22_s16 }
   0x3   :  { %s319_s17 = scalar_lea.vmem %s23_s16, 1024  ;;  %p324_p1 = scmp.lt.s32.totalorder %s23_s16, %s23_s16 }
   0x4   :  { %p320_p0 = scmp.ne.s32.totalorder %s23_s16, %s319_s17  ;;  %p325_p2 = scmp.lt.s32.totalorder %s319_s17, %s319_s17 }
   0x6   :  { %p326_p3 = por %p325_p2, %p324_p1 }
   0x8   :  { %p327_p4 = pnand %p326_p3, %p320_p0 }
   0xa   :  { %330 = shalt.err (!%p327_p4)
}
   0xb   :  { %s356_s18 = smov 64   ;;  %s357_s19 = smov 4  }
   0xc   :  { %28 = dma.hbm_to_vmem [thread:$0]  %s413_s3, 1024, %s23_s16, [#allocation3], %s356_s18, %s356_s18, %s357_s19  }
   0xd   :  { %351 = dma.done.wait [#allocation3], 1024  }
   0xe   :  { %352 = vsyncadd [#allocation3], 4294966272  ;;  %v358_v0 = vmov 0.0   ;;  %vm359_vm0 = vmmov 0   ;;  %v360_v1 = vmov 1   ;;  %v361_v2 = vmov 0  }
   0xf   :  { %264 = vmatprep.subr.bf16.mxu0 %v358_v0  ;;  %280 = vmatprep.mubr.msk.bf16.mxu0 %vm359_vm0, %v358_v0  ;;  %v302_v3 = vld [vmem:[#allocation2 + $0x38] sm:$0xff]   ;;  %v303_v4 = vld [vmem:[#allocation2 + $0x30] sm:$0xff]   ;;  %v304_v5 = vld [vmem:[#allocation2 + $0x28] sm:$0xff]   ;;  %v362_v11 = vmov 2   ;;  %v363_v13 = vmov 3   ;;  %v161_v16 = vlaneseq }
  0x10   :  { %297 = vset.pattern.permute.xlu1 %v360_v1  ;;  %296 = vset.pattern.permute.xlu0 %v361_v2  ;;  %v148_v6 = vld [vmem:[%s411_s1] sm:$0xff]  ;;  %v149_v8 = vld [vmem:[%s411_s1 + $0x8] sm:$0xff]  ;;  %v306_v9 = vld [vmem:[#allocation2 + $0x18] sm:$0xff]  }
  0x11   :  { %265 = vmatpush3.bf16.msra.mxu0 %v302_v3  ;;  %v305_v7 = vld [vmem:[#allocation2 + $0x20] sm:$0xff]   ;;  %170 = vperm.xlu1 %297, %v148_v6   ;;  %v307_v10 = vld [vmem:[#allocation2 + $0x10] sm:$0xff]   ;;  %v308_v12 = vld [vmem:[#allocation2 + $0x8] sm:$0xff]   ;;  %v162_v18 = vshrl.u32 %v161_v16, 7 }
  0x12   :  { %266 = vmatprep.subr.bf16.mxu0 %v358_v0  ;;  %153 = vperm.xlu0 %296, %v148_v6   ;;  %v309_v14 = vld [vmem:[#allocation2] sm:$0xff]  }
  0x13   :  { %v310_v15 = vld [vmem:[%s410_s0] sm:$0xff]   ;;  %v179_v20 = vsub.s32 1, %v162_v18  ;;  %v163_v21 = vsub.s32 0, %v162_v18  ;;  %v197_v26 = vsub.s32 2, %v162_v18  ;;  %v215_v32 = vsub.s32 3, %v162_v18  ;;  %s364_s0 = smov [#allocation5]  }
  0x14   :  { %v150_v22 = vld [vmem:[%s412_s2] sm:$0xf]  ;;  %s234_s2 = sshll.u32 %s364_s0, 4  ;;  %s235_s2 = int_to_ptr.vmem [resolvable:$true] %s234_s2 }
  0x15   :  { %267 = vmatpush3.bf16.msra.mxu0 %v303_v4  ;;  %174 = vperm.xlu1 %297, %v149_v8   ;;  %v180_v24 = vrot.slane %v150_v22, %v179_v20  ;;  %v164_v25 = vrot.slane %v150_v22, %v163_v21  ;;  %v198_v31 = vrot.slane %v150_v22, %v197_v26  ;;  %s331_s28 = scalar_lea.vmem %s235_s2, 256  ;;  %p336_p6 = scmp.lt.s32.totalorder %s235_s2, %s235_s2 }
  0x16   :  { %268 = vmatprep.subr.bf16.mxu0 %v358_v0  ;;  %158 = vperm.xlu0 %296, %v149_v8   ;;  %v216_v39 = vrot.slane %v150_v22, %v215_v32  ;;  %p332_p5 = scmp.ne.s32.totalorder %s235_s2, %s331_s28  ;;  %p337_p7 = scmp.lt.s32.totalorder %s331_s28, %s331_s28 }
  0x18   :  { %p338_p8 = por %p337_p7, %p336_p6 }
  0x19   :  { %269 = vmatpush3.bf16.msra.mxu0 %v304_v5  ;;  %299 = vset.pattern.permute.xlu1 %v362_v11 }
  0x1a   :  { %270 = vmatprep.subr.bf16.mxu0 %v358_v0  ;;  %298 = vset.pattern.permute.xlu0 %v362_v11  ;;  %p339_p9 = pnand %p338_p8, %p332_p5 }
  0x1b   :  { %192 = vperm.xlu1 %299, %v149_v8   ;;  %188 = vperm.xlu0 %298, %v148_v6  }
  0x1d   :  { %271 = vmatpush3.bf16.msra.mxu0 %v305_v7 }
  0x1e   :  { %272 = vmatprep.subr.bf16.mxu0 %v358_v0 }
  0x1f   :  { %300 = vset.pattern.permute.xlu1 %v363_v13  ;;  %301 = vset.pattern.permute.xlu0 %v363_v13 }
  0x20   :  { %206 = vperm.xlu1 %300, %v148_v6   ;;  %210 = vperm.xlu0 %301, %v149_v8  }
  0x21   :  { %273 = vmatpush3.bf16.msra.mxu0 %v306_v9 }
  0x22   :  { %274 = vmatprep.subr.bf16.mxu0 %v358_v0 }
  0x25   :  { %275 = vmatpush3.bf16.msra.mxu0 %v307_v10 }
  0x26   :  { %276 = vmatprep.subr.bf16.mxu0 %v358_v0 }
  0x29   :  { %277 = vmatpush3.bf16.msra.mxu0 %v308_v12 }
  0x2a   :  { %278 = vmatprep.subr.bf16.mxu0 %v358_v0 }
  0x2d   :  { %279 = vmatpush3.bf16.msra.mxu0 %v309_v14 }
  0x30   :  { %281 = vmatmul.mubr.bf16.vlgmr.msra.gmra.mxu0 %v310_v15 }
  0x8c   :  { %v171_v17 = vpop.permute.xlu1 %170 }
  0x8d   :  { %v154_v19 = vpop.permute.xlu0 %153  ;;  %v181_v29 = vsub.f32 %v171_v17, %v180_v24 }
  0x8e   :  { %v165_v30 = vsub.f32 %v154_v19, %v164_v25 }
  0x8f   :  { %v183_v36 = vand.u32 2147483647, %v181_v29 }
  0x90   :  { %v175_v23 = vpop.permute.xlu1 %174  ;;  %v167_v37 = vand.u32 2147483647, %v165_v30 }
  0x91   :  { %v159_v27 = vpop.permute.xlu0 %158  ;;  %v182_v33 = vsub.f32 %v175_v23, %v180_v24 }
  0x92   :  { %v166_v34 = vsub.f32 %v159_v27, %v164_v25  ;;  %v185_v43 = vadd.f32 %v183_v36, %v167_v37 }
  0x93   :  { %v184_v41 = vand.u32 2147483647, %v182_v33 }
  0x94   :  { %v168_v42 = vand.u32 2147483647, %v166_v34 }
  0x96   :  { %v193_v28 = vpop.permute.xlu1 %192  ;;  %v189_v35 = vpop.permute.xlu0 %188  ;;  %v186_v48 = vadd.f32 %v184_v41, %v168_v42 }
  0x97   :  { %v199_v38 = vsub.f32 %v189_v35, %v198_v31  ;;  %v200_v44 = vsub.f32 %v193_v28, %v198_v31 }
  0x99   :  { %v201_v45 = vand.u32 2147483647, %v199_v38  ;;  %v202_v49 = vand.u32 2147483647, %v200_v44 }
  0x9b   :  { %v207_v40 = vpop.permute.xlu1 %206  ;;  %v211_v47 = vpop.permute.xlu0 %210  ;;  %v203_v50 = vadd.f32 %v201_v45, %v185_v43  ;;  %v204_v53 = vadd.f32 %v202_v49, %v186_v48 }
  0x9c   :  { %v217_v46 = vsub.f32 %v207_v40, %v216_v39  ;;  %v218_v52 = vsub.f32 %v211_v47, %v216_v39 }
  0x9e   :  { %v219_v51 = vand.u32 2147483647, %v217_v46  ;;  %v220_v55 = vand.u32 2147483647, %v218_v52 }
  0xa0   :  { %v221_v54 = vadd.f32 %v219_v51, %v203_v50  ;;  %v222_v58 = vadd.f32 %v220_v55, %v204_v53 }
  0xa2   :  { %v223_v57 = vmul.f32 5.0, %v221_v54  ;;  %v224_v63 = vmul.f32 5.0, %v222_v58 }
  0xf0   :  { %v139_v56 = vpop.f32.mrf.mxu0 }
  0xf1   :  { %v146_v59 = vsub.f32 0.0, %v139_v56 }
  0xf2   :  { %v282_v60 = vpop.f32.mrf.mxu0 }
  0xf3   :  { %v225_v61 = vadd.f32 %v223_v57, %v146_v59 }
  0xf4   :  { %v142_v62 = vpop.f32.mrf.mxu0 }
  0xf5   :  { %227 = vst [vmem:[#allocation5] sm:$0xff] %v225_v61  ;;  %v147_v0 = vsub.f32 0.0, %v142_v62 }
  0xf6   :  { %v283_v1 = vpop.f32.mrf.mxu0 }
  0xf7   :  { %v226_v2 = vadd.f32 %v224_v63, %v147_v0 }
  0xf9   :  { %228 = vst [vmem:[#allocation5 + $0x8] sm:$0xff] %v226_v2 }
  0xfa   :  { %342 = shalt.err (!%p339_p9)
}
  0xfb   :  { %s365_s29 = smov 128   ;;  %s366_s30 = smov 8  }
  0xfc   :  { %240 = dma.vmem_to_hbm [thread:$0]  %s235_s2, 256, %s414_s4, [#allocation4], %s365_s29, %s365_s29, %s366_s30  }
  0xfd   :  { %353 = dma.done.wait [#allocation4], 256  }
  0xfe   :  { %354 = vsyncadd [#allocation4], 4294967040 }
  0xff   :  { %244 = vsyncpa [#allocation3], 1 }
 0x100   :  { %245 = vsyncpa [#allocation4], 1 }

</bundles_post_ra>
